<compile_context>
chip_gen: v6e
topology: v6e:2x2x1
jax: 0.10.0
libtpu: 0.0.40
codegen_flags: <defaults>
</compile_context>

<pallas_src>
import jax
import jax.numpy as jnp
from jax.experimental import pallas as pl
from jax.experimental.pallas import tpu as pltpu


def _round_up(x: int, m: int) -> int:
    return ((x + m - 1) // m) * m


def _cdiv(a: int, b: int) -> int:
    return -(-a // b)


def dqn_mlp_kernel(x_ref, w1_ref, b1_ref, w2_ref, b2_ref, w3_ref, b3_ref, o_ref):
    """Fused 3-layer MLP tile: relu(x@W1+b1) -> relu(.@W2+b2) -> .@W3+b3."""
    x = x_ref[...].astype(jnp.bfloat16)  # in-kernel bf16 cast of the (TILE_B, n_states) tile
    h1 = jnp.dot(x, w1_ref[...], preferred_element_type=jnp.float32) + b1_ref[...]
    h1 = jnp.maximum(h1, 0.0)
    h2 = (
        jnp.dot(h1.astype(jnp.bfloat16), w2_ref[...], preferred_element_type=jnp.float32)
        + b2_ref[...]
    )
    h2 = jnp.maximum(h2, 0.0)
    out = (
        jnp.dot(h2.astype(jnp.bfloat16), w3_ref[...], preferred_element_type=jnp.float32)
        + b3_ref[...]
    )
    o_ref[...] = out.astype(o_ref.dtype)


def prepare_params(params):
    """One-time prep: pad hidden dim to a lane-dense 128, cast weights to bf16.

    Call this once whenever the raw (f32, unpadded) parameters change; pass the
    result to dqn_net_forward on every call. The action dim is intentionally NOT
    padded (unpadded output writeback).
    """
    w1, b1, w2, b2, w3, b3 = params
    n_states, hidden = w1.shape
    n_actions = w3.shape[1]
    hid_pad = _round_up(hidden, 128)  # 50 -> 128

    def pad2(a, rows, cols):
        return jnp.pad(a, ((0, rows - a.shape[0]), (0, cols - a.shape[1])))

    w1p = pad2(w1, n_states, hid_pad).astype(jnp.bfloat16)   # (n_states, 128)
    b1p = pad2(b1, 1, hid_pad).astype(jnp.float32)           # (1, 128)
    w2p = pad2(w2, hid_pad, hid_pad).astype(jnp.bfloat16)    # (128, 128)
    b2p = pad2(b2, 1, hid_pad).astype(jnp.float32)           # (1, 128)
    w3p = pad2(w3, hid_pad, n_actions).astype(jnp.bfloat16)  # (128, n_actions) - unpadded cols
    b3p = b3.astype(jnp.float32)                             # (1, n_actions)
    return (w1p, b1p, w2p, b2p, w3p, b3p)


def _choose_tiling(B: int):
    """Pick (tile_b, n_steps). Small B: one minimally padded tile. Large B: >=2
    grid steps (v7x two-TC sharding) of <=~1024 rows, padding waste <= 8*steps rows."""
    if B <= 512:
        return _round_up(max(B, 1), 8), 1
    n_steps = max(2, _cdiv(B, 1024))
    tile_b = _round_up(_cdiv(B, n_steps), 8)
    return tile_b, n_steps


@jax.jit
def dqn_net_forward(x, prepared_params):
    """Run the fused Pallas MLP.

    x: (B, n_states) f32.  prepared_params: output of prepare_params().
    Returns (B, n_actions) f32.
    """
    w1p, b1p, w2p, b2p, w3p, b3p = prepared_params
    B, n_states = x.shape
    hid_pad = w1p.shape[1]
    n_actions = w3p.shape[1]

    tile_b, n_steps = _choose_tiling(B)
    b_pad = tile_b * n_steps

    # Only pad the batch if we must (f32, no dtype cast in the wrapper).
    x_p = x if b_pad == B else jnp.pad(x, ((0, b_pad - B), (0, 0)))

    flops = 2 * b_pad * (n_states * hid_pad + hid_pad * hid_pad + hid_pad * n_actions)
    bytes_accessed = (
        b_pad * n_states * 4                                   # x (f32 in)
        + b_pad * n_actions * 4                                # out (f32, unpadded)
        + (n_states * hid_pad + hid_pad * hid_pad + hid_pad * n_actions) * 2  # bf16 weights
        + (2 * hid_pad + n_actions) * 4                        # f32 biases
    )

    out_padded = pl.pallas_call(
        dqn_mlp_kernel,
        out_shape=jax.ShapeDtypeStruct((b_pad, n_actions), jnp.float32),
        grid=(n_steps,),
        in_specs=[
            pl.BlockSpec((tile_b, n_states), lambda i: (i, 0)),   # x tile, pipelined
            pl.BlockSpec((n_states, hid_pad), lambda i: (0, 0)),  # W1 resident
            pl.BlockSpec((1, hid_pad), lambda i: (0, 0)),         # b1 resident
            pl.BlockSpec((hid_pad, hid_pad), lambda i: (0, 0)),   # W2 resident
            pl.BlockSpec((1, hid_pad), lambda i: (0, 0)),         # b2 resident
            pl.BlockSpec((hid_pad, n_actions), lambda i: (0, 0)), # W3 resident (unpadded cols)
            pl.BlockSpec((1, n_actions), lambda i: (0, 0)),       # b3 resident
        ],
        out_specs=pl.BlockSpec((tile_b, n_actions), lambda i: (i, 0)),  # unpadded writeback
        compiler_params=pltpu.CompilerParams(
            dimension_semantics=("parallel",),
        ),
        cost_estimate=pl.CostEstimate(
            flops=flops, transcendentals=0, bytes_accessed=bytes_accessed
        ),
    )(x_p, w1p, b1p, w2p, b2p, w3p, b3p)

    return out_padded if b_pad == B else out_padded[:B]


def init_params(key, n_states, n_actions, hidden=50):
    """PyTorch-style uniform(-1/sqrt(fan_in), 1/sqrt(fan_in)) init (unpadded, f32)."""
    ks = jax.random.split(key, 6)

    def uni(k, shape, fan_in):
        bound = 1.0 / jnp.sqrt(jnp.float32(fan_in))
        return jax.random.uniform(k, shape, jnp.float32, -bound, bound)

    w1 = uni(ks[0], (n_states, hidden), n_states)
    b1 = uni(ks[1], (1, hidden), n_states)        # kept 2-D for clean TPU layout
    w2 = uni(ks[2], (hidden, hidden), hidden)
    b2 = uni(ks[3], (1, hidden), hidden)
    w3 = uni(ks[4], (hidden, n_actions), hidden)
    b3 = uni(ks[5], (1, n_actions), hidden)
    return (w1, b1, w2, b2, w3, b3)


def reference_forward_f32(x, params):
    """Pure f32 reference (matches the PyTorch module exactly)."""
    w1, b1, w2, b2, w3, b3 = params
    h1 = jnp.maximum(x @ w1 + b1, 0.0)
    h2 = jnp.maximum(h1 @ w2 + b2, 0.0)
    return h2 @ w3 + b3


def reference_forward_matched(x, prepared_params):
    """Reference replicating the kernel's padding + bf16 operand / f32 accum choices."""
    w1p, b1p, w2p, b2p, w3p, b3p = prepared_params
    xb = x.astype(jnp.bfloat16)
    h1 = jnp.maximum(jnp.dot(xb, w1p, preferred_element_type=jnp.float32) + b1p, 0.0)
    h2 = jnp.maximum(
        jnp.dot(h1.astype(jnp.bfloat16), w2p, preferred_element_type=jnp.float32) + b2p, 0.0
    )
    return jnp.dot(h2.astype(jnp.bfloat16), w3p, preferred_element_type=jnp.float32) + b3p


if __name__ == "__main__":
    B, n_states, n_actions = 2, 4, 3
    key = jax.random.PRNGKey(0)
    k_x, k_p = jax.random.split(key)
    x = jax.random.normal(k_x, (B, n_states), dtype=jnp.float32)
    params = init_params(k_p, n_states, n_actions)

    prepared = prepare_params(params)          # one-time pad + bf16 cast (hoisted)
    out = dqn_net_forward(x, prepared)
    out = jax.block_until_ready(out)
    assert out.shape == (B, n_actions)

    # Tight check vs a reference doing the same bf16-operand / f32-accum math.
    ref_matched = reference_forward_matched(x, prepared)
    assert jnp.allclose(out, ref_matched, atol=1e-4, rtol=1e-4), "mismatch vs matched ref"

    # Loose check vs the exact f32 PyTorch-equivalent forward (bf16 operand rounding).
    ref_f32 = reference_forward_f32(x, params)
    assert jnp.allclose(out, ref_f32, atol=5e-2, rtol=5e-2), "mismatch vs f32 reference"

    print("KERNEL_OK")
</pallas_src>

<mosaic_0001>
module attributes {stable_mosaic.version = 11 : i64} {
  func.func @dqn_mlp_kernel(%arg0: i32, %arg1: memref<8x4xf32, #tpu.memory_space<vmem>>, %arg2: memref<4x128xbf16, #tpu.memory_space<vmem>>, %arg3: memref<1x128xf32, #tpu.memory_space<vmem>>, %arg4: memref<128x128xbf16, #tpu.memory_space<vmem>>, %arg5: memref<1x128xf32, #tpu.memory_space<vmem>>, %arg6: memref<128x3xbf16, #tpu.memory_space<vmem>>, %arg7: memref<1x3xf32, #tpu.memory_space<vmem>>, %arg8: memref<8x3xf32, #tpu.memory_space<vmem>>) attributes {dimension_semantics = [#tpu.dimension_semantics<parallel>], iteration_bounds = array<i64: 1>, scalar_prefetch = 0 : i64, scratch_operands = 0 : i64, tpu.core_type = #tpu.core_type<tc>, window_params = [{transform_indices = @transform_0, window_bounds = array<i64: 8, 4>}, {pipeline_mode = #tpu.pipeline_mode<synchronous>, transform_indices = @transform_1, window_bounds = array<i64: 4, 128>}, {pipeline_mode = #tpu.pipeline_mode<synchronous>, transform_indices = @transform_2, window_bounds = array<i64: 1, 128>}, {pipeline_mode = #tpu.pipeline_mode<synchronous>, transform_indices = @transform_3, window_bounds = array<i64: 128, 128>}, {pipeline_mode = #tpu.pipeline_mode<synchronous>, transform_indices = @transform_4, window_bounds = array<i64: 1, 128>}, {pipeline_mode = #tpu.pipeline_mode<synchronous>, transform_indices = @transform_5, window_bounds = array<i64: 128, 3>}, {pipeline_mode = #tpu.pipeline_mode<synchronous>, transform_indices = @transform_6, window_bounds = array<i64: 1, 3>}, {transform_indices = @transform_7, window_bounds = array<i64: 8, 3>}]} {
    %c0 = arith.constant 0 : index
    %c0_0 = arith.constant 0 : index
    %0 = vector.load %arg1[%c0, %c0_0] : memref<8x4xf32, #tpu.memory_space<vmem>>, vector<8x4xf32>
    %1 = arith.truncf %0 : vector<8x4xf32> to vector<8x4xbf16>
    %c0_1 = arith.constant 0 : index
    %c0_2 = arith.constant 0 : index
    %2 = vector.load %arg2[%c0_1, %c0_2] : memref<4x128xbf16, #tpu.memory_space<vmem>>, vector<4x128xbf16>
    %cst = arith.constant dense<0.000000e+00> : vector<8x128xf32>
    %3 = tpu.matmul %1, %2, %cst {dimension_numbers = #tpu.dot_dimension_numbers<[1], [0], [0], [1], [0, 0, 1, 1], [], []>} : vector<8x4xbf16>, vector<4x128xbf16>, vector<8x128xf32> -> vector<8x128xf32>
    %c0_3 = arith.constant 0 : index
    %c0_4 = arith.constant 0 : index
    %4 = vector.load %arg3[%c0_3, %c0_4] : memref<1x128xf32, #tpu.memory_space<vmem>>, vector<1x128xf32>
    %5 = vector.broadcast %4 : vector<1x128xf32> to vector<8x128xf32>
    %6 = arith.addf %3, %5 : vector<8x128xf32>
    %cst_5 = arith.constant 0.000000e+00 : f32
    %7 = vector.broadcast %cst_5 : f32 to vector<8x128xf32>
    %8 = arith.maximumf %6, %7 : vector<8x128xf32>
    %9 = arith.truncf %8 : vector<8x128xf32> to vector<8x128xbf16>
    %c0_6 = arith.constant 0 : index
    %c0_7 = arith.constant 0 : index
    %10 = vector.load %arg4[%c0_6, %c0_7] : memref<128x128xbf16, #tpu.memory_space<vmem>>, vector<128x128xbf16>
    %cst_8 = arith.constant dense<0.000000e+00> : vector<8x128xf32>
    %11 = tpu.matmul %9, %10, %cst_8 {dimension_numbers = #tpu.dot_dimension_numbers<[1], [0], [0], [1], [0, 0, 1, 1], [], []>} : vector<8x128xbf16>, vector<128x128xbf16>, vector<8x128xf32> -> vector<8x128xf32>
    %c0_9 = arith.constant 0 : index
    %c0_10 = arith.constant 0 : index
    %12 = vector.load %arg5[%c0_9, %c0_10] : memref<1x128xf32, #tpu.memory_space<vmem>>, vector<1x128xf32>
    %13 = vector.broadcast %12 : vector<1x128xf32> to vector<8x128xf32>
    %14 = arith.addf %11, %13 : vector<8x128xf32>
    %cst_11 = arith.constant 0.000000e+00 : f32
    %15 = vector.broadcast %cst_11 : f32 to vector<8x128xf32>
    %16 = arith.maximumf %14, %15 : vector<8x128xf32>
    %17 = arith.truncf %16 : vector<8x128xf32> to vector<8x128xbf16>
    %c0_12 = arith.constant 0 : index
    %c0_13 = arith.constant 0 : index
    %18 = vector.load %arg6[%c0_12, %c0_13] : memref<128x3xbf16, #tpu.memory_space<vmem>>, vector<128x3xbf16>
    %cst_14 = arith.constant dense<0.000000e+00> : vector<8x3xf32>
    %19 = tpu.matmul %17, %18, %cst_14 {dimension_numbers = #tpu.dot_dimension_numbers<[1], [0], [0], [1], [0, 0, 1, 1], [], []>} : vector<8x128xbf16>, vector<128x3xbf16>, vector<8x3xf32> -> vector<8x3xf32>
    %c0_15 = arith.constant 0 : index
    %c0_16 = arith.constant 0 : index
    %20 = vector.load %arg7[%c0_15, %c0_16] : memref<1x3xf32, #tpu.memory_space<vmem>>, vector<1x3xf32>
    %21 = vector.broadcast %20 : vector<1x3xf32> to vector<8x3xf32>
    %22 = arith.addf %19, %21 : vector<8x3xf32>
    %c0_17 = arith.constant 0 : index
    %c0_18 = arith.constant 0 : index
    %23 = vector.load %arg8[%c0_17, %c0_18] : memref<8x3xf32, #tpu.memory_space<vmem>>, vector<8x3xf32>
    tpu.vector_store %arg8[%c0_17, %c0_18], %22 {strides = array<i32>} : memref<8x3xf32, #tpu.memory_space<vmem>>, vector<8x3xf32>,
    return
  }
  func.func @transform_0(%arg0: i32) -> (i32, i32) {
    %c0_i32 = arith.constant 0 : i32
    %c0_i32_0 = arith.constant 0 : i32
    return %arg0, %c0_i32 : i32, i32
  }
  func.func @transform_1(%arg0: i32) -> (i32, i32) {
    %c0_i32 = arith.constant 0 : i32
    %c0_i32_0 = arith.constant 0 : i32
    %c0_i32_1 = arith.constant 0 : i32
    return %c0_i32, %c0_i32_0 : i32, i32
  }
  func.func @transform_2(%arg0: i32) -> (i32, i32) {
    %c0_i32 = arith.constant 0 : i32
    %c0_i32_0 = arith.constant 0 : i32
    %c0_i32_1 = arith.constant 0 : i32
    return %c0_i32, %c0_i32_0 : i32, i32
  }
  func.func @transform_3(%arg0: i32) -> (i32, i32) {
    %c0_i32 = arith.constant 0 : i32
    %c0_i32_0 = arith.constant 0 : i32
    %c0_i32_1 = arith.constant 0 : i32
    return %c0_i32, %c0_i32_0 : i32, i32
  }
  func.func @transform_4(%arg0: i32) -> (i32, i32) {
    %c0_i32 = arith.constant 0 : i32
    %c0_i32_0 = arith.constant 0 : i32
    %c0_i32_1 = arith.constant 0 : i32
    return %c0_i32, %c0_i32_0 : i32, i32
  }
  func.func @transform_5(%arg0: i32) -> (i32, i32) {
    %c0_i32 = arith.constant 0 : i32
    %c0_i32_0 = arith.constant 0 : i32
    %c0_i32_1 = arith.constant 0 : i32
    return %c0_i32, %c0_i32_0 : i32, i32
  }
  func.func @transform_6(%arg0: i32) -> (i32, i32) {
    %c0_i32 = arith.constant 0 : i32
    %c0_i32_0 = arith.constant 0 : i32
    %c0_i32_1 = arith.constant 0 : i32
    return %c0_i32, %c0_i32_0 : i32, i32
  }
  func.func @transform_7(%arg0: i32) -> (i32, i32) {
    %c0_i32 = arith.constant 0 : i32
    %c0_i32_0 = arith.constant 0 : i32
    return %arg0, %c0_i32 : i32, i32
  }
}

</mosaic_0001>

<bundles_post_ra>
// kernel: dqn_net_forward.1
= control target key start
LH: loop header
LB: loop body
LE: loop exit
PB: predicated region body
PF: predicated region fallthrough
CT: control target
= control target key end

     0   :  { %vm41_vm0 = vcmask 1041408   ;;  %v421_v0 = vmov 0.0   ;;  %vm422_vm1 = vmmov 0   ;;  %vm37_vm2 = vcmask 31744   ;;  %s552_s1 = inlined_call_operand.vmem [shape: bf16[4,128], index: 1, kind: input, shape index: {}]   ;;  %s553_s0 = inlined_call_operand.vmem [shape: f32[8,4], index: 0, kind: input, shape index: {}]   ;;  %s554_s3 = inlined_call_operand.vmem [shape: bf16[128,128], index: 3, kind: input, shape index: {}]   ;;  %s555_s5 = inlined_call_operand.vmem [shape: bf16[128,3], index: 5, kind: input, shape index: {}]   ;;  %s556_s2 = inlined_call_operand.vmem [shape: f32[1,128], index: 2, kind: input, shape index: {}]   ;;  %s557_s4 = inlined_call_operand.vmem [shape: f32[1,128], index: 4, kind: input, shape index: {}]   ;;  %s558_s6 = inlined_call_operand.vmem [shape: f32[1,3], index: 6, kind: input, shape index: {}]   ;;  %s559_s7 = inlined_call_operand.vmem [shape: f32[8,3], index: 7, kind: output, shape index: {}]  }
   0x1   :  { %357 = vmatprep.subr.bf16.mxu0 %v421_v0  ;;  %v29_v1 = vld [vmem:[%s552_s1] sm:$0x3]  ;;  %359 = vmatprep.mubr.msk.bf16.mxu0 %vm422_vm1, %v421_v0  ;;  %v405_v5 = vld [vmem:[%s554_s3 + $0x38] sm:$0xff]   ;;  %v406_v6 = vld [vmem:[%s554_s3 + $0x30] sm:$0xff]   ;;  %vm311_vm3 = vcmask 23552  }
   0x2   :  { %v27_v2 = vld [vmem:[%s553_s0] sm:$0xff]  ;;  %v43_v3 = vsel %vm41_vm0, %v29_v1, 0  ;;  %363 = vmatprep.subr.bf16.mxu1 %v421_v0  ;;  %379 = vmatprep.mubr.msk.bf16.mxu1 %vm422_vm1, %v421_v0  ;;  %v407_v7 = vld [vmem:[%s554_s3 + $0x28] sm:$0xff]   ;;  %v409_v9 = vld [vmem:[%s554_s3 + $0x18] sm:$0xff]  }
   0x3   :  { %v28_v4 = vpack.c.bf16 %v27_v2, %v27_v2  ;;  %358 = vmatpush3.bf16.msra.mxu0 %v43_v3  ;;  %364 = vmatpush3.bf16.msra.mxu1 %v405_v5  ;;  %v408_v8 = vld [vmem:[%s554_s3 + $0x20] sm:$0xff]   ;;  %v410_v10 = vld [vmem:[%s554_s3 + $0x10] sm:$0xff]   ;;  %v411_v11 = vld [vmem:[%s554_s3 + $0x8] sm:$0xff]  }
   0x4   :  { %383 = vmatprep.subr.bf16.mxu0 %v421_v0  ;;  %365 = vmatprep.subr.bf16.mxu1 %v421_v0  ;;  %v412_v12 = vld [vmem:[%s554_s3] sm:$0xff]   ;;  %v413_v13 = vld [vmem:[%s555_s5 + $0x38] sm:$0xff]   ;;  %v414_v14 = vld [vmem:[%s555_s5 + $0x30] sm:$0xff]  }
   0x5   :  { %v415_v15 = vld [vmem:[%s555_s5 + $0x28] sm:$0xff]   ;;  %v416_v16 = vld [vmem:[%s555_s5 + $0x20] sm:$0xff]   ;;  %v417_v17 = vld [vmem:[%s555_s5 + $0x18] sm:$0xff]  }
   0x6   :  { %360 = vmatmul.mubr.msk.bf16.vlgmr.msra.gmra.mxu0 %vm37_vm2, %v28_v4  ;;  %v418_v18 = vld [vmem:[%s555_s5 + $0x10] sm:$0xff]   ;;  %v317_v19 = vld [vmem:[%s556_s2] ss:$0 sm:$0xff]  ;;  %v419_v27 = vld [vmem:[%s555_s5 + $0x8] sm:$0xff]  }
   0x7   :  { %399 = vmatprep.mubr.msk.bf16.mxu0 %vm422_vm1, %v421_v0  ;;  %366 = vmatpush3.bf16.msra.mxu1 %v406_v6  ;;  %v420_v28 = vld [vmem:[%s555_s5] sm:$0xff]  }
   0x8   :  { %367 = vmatprep.subr.bf16.mxu1 %v421_v0  ;;  %384 = vmatpush3.bf16.msra.mxu0 %v413_v13  ;;  %v319_v29 = vld [vmem:[%s557_s4] ss:$0 sm:$0xff] }
   0x9   :  { %385 = vmatprep.subr.bf16.mxu0 %v421_v0  ;;  %v328_v37 = vld [vmem:[%s558_s6] ss:$0 sm:$0xff] }
   0xb   :  { %368 = vmatpush3.bf16.msra.mxu1 %v407_v7 }
   0xc   :  { %369 = vmatprep.subr.bf16.mxu1 %v421_v0  ;;  %386 = vmatpush3.bf16.msra.mxu0 %v414_v14 }
   0xd   :  { %387 = vmatprep.subr.bf16.mxu0 %v421_v0 }
   0xf   :  { %370 = vmatpush3.bf16.msra.mxu1 %v408_v8 }
  0x10   :  { %371 = vmatprep.subr.bf16.mxu1 %v421_v0  ;;  %388 = vmatpush3.bf16.msra.mxu0 %v415_v15 }
  0x11   :  { %389 = vmatprep.subr.bf16.mxu0 %v421_v0 }
  0x13   :  { %372 = vmatpush3.bf16.msra.mxu1 %v409_v9 }
  0x14   :  { %373 = vmatprep.subr.bf16.mxu1 %v421_v0  ;;  %390 = vmatpush3.bf16.msra.mxu0 %v416_v16 }
  0x15   :  { %391 = vmatprep.subr.bf16.mxu0 %v421_v0 }
  0x17   :  { %374 = vmatpush3.bf16.msra.mxu1 %v410_v10 }
  0x18   :  { %375 = vmatprep.subr.bf16.mxu1 %v421_v0  ;;  %392 = vmatpush3.bf16.msra.mxu0 %v417_v17 }
  0x19   :  { %393 = vmatprep.subr.bf16.mxu0 %v421_v0 }
  0x1b   :  { %376 = vmatpush3.bf16.msra.mxu1 %v411_v11 }
  0x1c   :  { %377 = vmatprep.subr.bf16.mxu1 %v421_v0  ;;  %394 = vmatpush3.bf16.msra.mxu0 %v418_v18 }
  0x1d   :  { %395 = vmatprep.subr.bf16.mxu0 %v421_v0 }
  0x1f   :  { %378 = vmatpush3.bf16.msra.mxu1 %v412_v12 }
  0x20   :  { %396 = vmatpush3.bf16.msra.mxu0 %v419_v27 }
  0x21   :  { %397 = vmatprep.subr.bf16.mxu0 %v421_v0 }
  0x24   :  { %398 = vmatpush3.bf16.msra.mxu0 %v420_v28 }
  0xc6   :  { %v79_v20 = vpop.f32.mrf.mxu0 }
  0xc7   :  { %v80_v21 = vadd.f32 %v317_v19, %v79_v20 }
  0xc8   :  { %v361_v22 = vpop.f32.mrf.mxu0 }
  0xc9   :  { %v85_v23 = vmax.f32 %v80_v21, 0.0 }
  0xca   :  { %v82_v24 = vpop.f32.mrf.mxu0 }
  0xcb   :  { %v86_v25 = vpack.c.bf16 %v85_v23, %v85_v23 }
  0xcc   :  { %v362_v26 = vpop.f32.mrf.mxu0 }
  0xcd   :  { %380 = vmatmul.mubr.bf16.vlgmr.msra.gmra.mxu1 %v86_v25 }
 0x18d   :  { %v192_v30 = vpop.f32.mrf.mxu1 }
 0x18e   :  { %v193_v31 = vadd.f32 %v319_v29, %v192_v30 }
 0x18f   :  { %v381_v32 = vpop.f32.mrf.mxu1 }
 0x190   :  { %v198_v33 = vmax.f32 %v193_v31, 0.0 }
 0x191   :  { %v195_v34 = vpop.f32.mrf.mxu1 }
 0x192   :  { %v199_v35 = vpack.c.bf16 %v198_v33, %v198_v33 }
 0x193   :  { %v382_v36 = vpop.f32.mrf.mxu1 }
 0x194   :  { %400 = vmatmul.mubr.bf16.vlgmr.msra.gmra.mxu0 %v199_v35 }
 0x254   :  { %v305_v38 = vpop.f32.mrf.mxu0 }
 0x255   :  { %v306_v39 = vadd.f32 %v328_v37, %v305_v38 }
 0x256   :  { %v401_v40 = vpop.f32.mrf.mxu0 }
 0x257   :  { %312 = vst.msk [vmem:[%s559_s7] sm:$0xff] %vm311_vm3, %v306_v39 }
 0x258   :  { %v308_v41 = vpop.f32.mrf.mxu0 }
 0x25a   :  { %v402_v42 = vpop.f32.mrf.mxu0 }

</bundles_post_ra>
